<compile_context>
chip_gen: v6e
topology: v6e:2x2x1
jax: 0.10.0
libtpu: 0.0.40
codegen_flags: <defaults>
</compile_context>

<pallas_src>
import functools

import jax
import jax.numpy as jnp
from jax.experimental import pallas as pl
from jax.experimental.pallas import tpu as pltpu


# --------------------------------------------------------------------------
# Fused single-invocation kernel (whole problem VMEM-resident).
# --------------------------------------------------------------------------
def _fused_conv_bn_relu_kernel(pt_ref, w_ref, g_ref, b_ref, o_ref, *, m_true, eps):
    """Conv matmul + training-mode BN (batch stats) + ReLU, all in one pass.

    pt_ref : (K, M)      bf16 im2col patches (features on sublanes, M on lanes)
    w_ref  : (C_out, K)  bf16 flattened conv weights
    g_ref  : (C_out, 1)  f32 BN gamma
    b_ref  : (C_out, 1)  f32 BN beta
    o_ref  : (C_out, M)  f32 ReLU(BN(conv)) output (lane-dense stores)
    """
    # MXU: bf16 inputs, f32 accumulation.
    y = jnp.dot(w_ref[...], pt_ref[...], preferred_element_type=jnp.float32)

    # Per-channel batch statistics (padded columns are exactly zero and
    # contribute nothing; we divide by the true M).  Cross-lane reduce -> XLU.
    ch_sum = jnp.sum(y, axis=1, keepdims=True)
    ch_ssq = jnp.sum(y * y, axis=1, keepdims=True)
    mean = ch_sum / m_true
    var = ch_ssq / m_true - mean * mean          # biased variance (training)
    inv_std = jax.lax.rsqrt(var + eps)           # EUP slot

    scale = g_ref[...] * inv_std
    shift = b_ref[...] - mean * scale
    o_ref[...] = jnp.maximum(y * scale + shift, 0.0)


# --------------------------------------------------------------------------
# Tiled two-pass kernels (fallback for M too large to keep VMEM-resident).
# --------------------------------------------------------------------------
def _conv_stats_kernel(pt_ref, w_ref, y_ref, sum_ref, ssq_ref):
    """Pass 1: conv-as-matmul for one M tile + global per-channel stats."""
    i = pl.program_id(0)

    y = jnp.dot(w_ref[...], pt_ref[...], preferred_element_type=jnp.float32)
    y_ref[...] = y

    @pl.when(i == 0)
    def _():
        sum_ref[...] = jnp.zeros_like(sum_ref)
        ssq_ref[...] = jnp.zeros_like(ssq_ref)

    sum_ref[...] += jnp.sum(y, axis=1, keepdims=True)
    ssq_ref[...] += jnp.sum(y * y, axis=1, keepdims=True)


def _bn_relu_kernel(y_ref, scale_ref, shift_ref, o_ref):
    """Pass 2: folded BatchNorm affine + ReLU on one lane-dense tile (f32)."""
    o_ref[...] = jnp.maximum(y_ref[...] * scale_ref[...] + shift_ref[...], 0.0)


# --------------------------------------------------------------------------
# Host-side helpers + wrapper.
# --------------------------------------------------------------------------
def _im2col_t_nchw(x, k, s, p, dtype):
    """x: (N, C, H, W) -> transposed patches (C*k*k, N*OH*OW).

    Row order (c, kh, kw) matches weight.reshape(C_out, C_in*k*k); column order
    (n, oh, ow) matches the final reshape back to NCHW.
    """
    n, c, h, w = x.shape
    oh = (h + 2 * p - k) // s + 1
    ow = (w + 2 * p - k) // s + 1
    xp = jnp.pad(x, ((0, 0), (0, 0), (p, p), (p, p)))
    taps = []
    for kh in range(k):
        for kw in range(k):
            taps.append(xp[:, :, kh:kh + s * oh:s, kw:kw + s * ow:s])  # (N,C,OH,OW)
    pat = jnp.stack(taps, axis=0)               # (k*k, N, C, OH, OW)
    pat = jnp.transpose(pat, (2, 0, 1, 3, 4))   # (C, k*k, N, OH, OW)
    pat = pat.reshape(c * k * k, n * oh * ow)   # (K, M)
    return pat.astype(dtype), oh, ow


def conv_bn_relu(x, weight, bias, gamma, beta, k, s=1, p=0, *, tm=512, eps=1e-5,
                 fused_vmem_budget=16 * 1024 * 1024):
    """Conv2d(k, s, p) + BatchNorm2d (training-mode stats) + ReLU.

    x: (N, C_in, H, W) f32 NCHW; weight: (C_out, C_in, k, k). Returns NCHW f32.
    `bias` is accepted for interface parity but is mathematically a no-op:
    training-mode BN subtracts the per-channel mean, cancelling any
    channel-constant bias exactly.
    """
    del bias  # exactly cancelled by the BN mean subtraction
    assert tm % 128 == 0, "lane tile must be a multiple of 128"
    n, c_in, h, w = x.shape
    c_out = weight.shape[0]

    # TODO(synk): replace the host-side im2col (k*k-duplicated HBM stream) with
    # an in-kernel shift-and-accumulate over the k*k taps (needs overlapping
    # element-offset windows / manual DMA); kept in XLA for robustness here.
    patches_t, oh, ow = _im2col_t_nchw(x, k, s, p, jnp.bfloat16)   # (K, M)
    k_dim, m_dim = patches_t.shape
    w_t = weight.reshape(c_out, k_dim).astype(jnp.bfloat16)        # (C_out, K)
    gamma2 = gamma.reshape(c_out, 1).astype(jnp.float32)
    beta2 = beta.reshape(c_out, 1).astype(jnp.float32)

    m128 = pl.cdiv(m_dim, 128) * 128

    # ---------------- Fully fused path (small problems) ----------------
    fused_bytes = (k_dim * m128 * 2        # bf16 patches
                   + c_out * k_dim * 2     # bf16 weights
                   + c_out * m128 * 4      # f32 output
                   + 2 * c_out * 4)        # gamma / beta
    if 2 * fused_bytes <= fused_vmem_budget:   # 2x: double-buffer headroom
        pt = patches_t
        if m128 != m_dim:
            pt = jnp.pad(pt, ((0, 0), (0, m128 - m_dim)))
        out_t = pl.pallas_call(
            functools.partial(_fused_conv_bn_relu_kernel,
                              m_true=float(m_dim), eps=float(eps)),
            out_shape=jax.ShapeDtypeStruct((c_out, m128), jnp.float32),
            grid=(1,),
            in_specs=[
                pl.BlockSpec((k_dim, m128), lambda i: (0, 0)),
                pl.BlockSpec((c_out, k_dim), lambda i: (0, 0)),
                pl.BlockSpec((c_out, 1), lambda i: (0, 0)),
                pl.BlockSpec((c_out, 1), lambda i: (0, 0)),
            ],
            out_specs=pl.BlockSpec((c_out, m128), lambda i: (0, 0)),
        )(pt, w_t, gamma2, beta2)
        out = out_t[:, :m_dim].reshape(c_out, n, oh, ow).transpose(1, 0, 2, 3)
        return out

    # ---------------- Tiled two-pass path (large M) ----------------
    tm_eff = min(tm, m128)                     # both multiples of 128
    m_pad = pl.cdiv(m_dim, tm_eff) * tm_eff
    if m_pad != m_dim:
        patches_t = jnp.pad(patches_t, ((0, 0), (0, m_pad - m_dim)))
    grid = (m_pad // tm_eff,)

    # Pass 1: conv matmul + per-channel sum / sum-of-squares.
    y, ch_sum, ch_ssq = pl.pallas_call(
        _conv_stats_kernel,
        out_shape=(
            jax.ShapeDtypeStruct((c_out, m_pad), jnp.float32),
            jax.ShapeDtypeStruct((c_out, 1), jnp.float32),
            jax.ShapeDtypeStruct((c_out, 1), jnp.float32),
        ),
        grid=grid,
        in_specs=[
            pl.BlockSpec((k_dim, tm_eff), lambda i: (0, i)),
            pl.BlockSpec((c_out, k_dim), lambda i: (0, 0)),
        ],
        out_specs=(
            pl.BlockSpec((c_out, tm_eff), lambda i: (0, i)),
            pl.BlockSpec((c_out, 1), lambda i: (0, 0)),
            pl.BlockSpec((c_out, 1), lambda i: (0, 0)),
        ),
        compiler_params=pltpu.CompilerParams(
            dimension_semantics=("arbitrary",)),   # stats carry across M tiles
    )(patches_t, w_t)

    # Fold BN(mean, var, gamma, beta) into per-channel scale/shift (tiny XLA op).
    m_true = jnp.float32(m_dim)
    mean = ch_sum / m_true
    var = ch_ssq / m_true - mean * mean            # biased variance (training)
    inv_std = jax.lax.rsqrt(var + eps)
    scale = gamma2 * inv_std
    shift = beta2 - mean * scale

    # Pass 2: normalize + ReLU, tiled & parallel over M.
    out_t = pl.pallas_call(
        _bn_relu_kernel,
        out_shape=jax.ShapeDtypeStruct((c_out, m_pad), jnp.float32),
        grid=grid,
        in_specs=[
            pl.BlockSpec((c_out, tm_eff), lambda i: (0, i)),
            pl.BlockSpec((c_out, 1), lambda i: (0, 0)),
            pl.BlockSpec((c_out, 1), lambda i: (0, 0)),
        ],
        out_specs=pl.BlockSpec((c_out, tm_eff), lambda i: (0, i)),
        compiler_params=pltpu.CompilerParams(
            dimension_semantics=("parallel",)),    # independent tiles -> 2 TCs on v7x
    )(y, scale, shift)

    out = out_t[:, :m_dim].reshape(c_out, n, oh, ow).transpose(1, 0, 2, 3)
    return out


def _reference(x, weight, bias, gamma, beta, k, s, p):
    # Pure-JAX f32 reference matching the PyTorch module's forward.
    y = jax.lax.conv_general_dilated(
        x, weight, window_strides=(s, s), padding=[(p, p), (p, p)],
        dimension_numbers=("NCHW", "OIHW", "NCHW"))
    y = y + bias.reshape(1, -1, 1, 1)
    mean = jnp.mean(y, axis=(0, 2, 3), keepdims=True)
    var = jnp.mean((y - mean) ** 2, axis=(0, 2, 3), keepdims=True)
    yh = (y - mean) * jax.lax.rsqrt(var + 1e-5)
    yb = yh * gamma.reshape(1, -1, 1, 1) + beta.reshape(1, -1, 1, 1)
    return jnp.maximum(yb, 0.0)


if __name__ == "__main__":
    # Module config: Conv_BN_ReLU(in_chs=4, out_chs=8, k=3, s=1, p=1,
    #                             conv_type=None, relu_type='relu')
    in_chs, out_chs, k, s, p = 4, 8, 3, 1, 1
    N, H, W = 2, 16, 16

    key = jax.random.PRNGKey(0)
    kx, kw_, kb = jax.random.split(key, 3)
    x = jax.random.normal(kx, (N, in_chs, H, W), dtype=jnp.float32)
    weight = jax.random.normal(kw_, (out_chs, in_chs, k, k), dtype=jnp.float32) * 0.1
    bias = jax.random.normal(kb, (out_chs,), dtype=jnp.float32) * 0.1
    gamma = jnp.ones((out_chs,), dtype=jnp.float32)   # BatchNorm2d default weight
    beta = jnp.zeros((out_chs,), dtype=jnp.float32)   # BatchNorm2d default bias

    out = conv_bn_relu(x, weight, bias, gamma, beta, k, s, p)
    out = jax.block_until_ready(out)

    ref = _reference(x, weight, bias, gamma, beta, k, s, p)
    assert out.shape == (N, out_chs, H, W), out.shape
    # bf16 matmul inputs (MXU-native) -> relaxed tolerance vs the f32 reference.
    max_err = float(jnp.max(jnp.abs(out - ref)))
    assert jnp.allclose(out, ref, atol=5e-2, rtol=5e-2), max_err

    print("KERNEL_OK")
</pallas_src>

<mosaic_0001>
module attributes {stable_mosaic.version = 11 : i64} {
  func.func @_fused_conv_bn_relu_kernel(%arg0: i32, %arg1: memref<36x512xbf16, #tpu.memory_space<vmem>>, %arg2: memref<8x36xbf16, #tpu.memory_space<vmem>>, %arg3: memref<8x1xf32, #tpu.memory_space<vmem>>, %arg4: memref<8x1xf32, #tpu.memory_space<vmem>>, %arg5: memref<8x512xf32, #tpu.memory_space<vmem>>) attributes {dimension_semantics = [#tpu.dimension_semantics<arbitrary>], iteration_bounds = array<i64: 1>, scalar_prefetch = 0 : i64, scratch_operands = 0 : i64, tpu.core_type = #tpu.core_type<tc>, window_params = [{pipeline_mode = #tpu.pipeline_mode<synchronous>, transform_indices = @transform_0, window_bounds = array<i64: 36, 512>}, {pipeline_mode = #tpu.pipeline_mode<synchronous>, transform_indices = @transform_1, window_bounds = array<i64: 8, 36>}, {pipeline_mode = #tpu.pipeline_mode<synchronous>, transform_indices = @transform_2, window_bounds = array<i64: 8, 1>}, {pipeline_mode = #tpu.pipeline_mode<synchronous>, transform_indices = @transform_3, window_bounds = array<i64: 8, 1>}, {pipeline_mode = #tpu.pipeline_mode<synchronous>, transform_indices = @transform_4, window_bounds = array<i64: 8, 512>}]} {
    %c0 = arith.constant 0 : index
    %c0_0 = arith.constant 0 : index
    %0 = vector.load %arg2[%c0, %c0_0] : memref<8x36xbf16, #tpu.memory_space<vmem>>, vector<8x36xbf16>
    %c0_1 = arith.constant 0 : index
    %c0_2 = arith.constant 0 : index
    %1 = vector.load %arg1[%c0_1, %c0_2] : memref<36x512xbf16, #tpu.memory_space<vmem>>, vector<36x512xbf16>
    %cst = arith.constant dense<0.000000e+00> : vector<8x512xf32>
    %2 = tpu.matmul %0, %1, %cst {dimension_numbers = #tpu.dot_dimension_numbers<[1], [0], [0], [1], [0, 0, 1, 1], [], []>} : vector<8x36xbf16>, vector<36x512xbf16>, vector<8x512xf32> -> vector<8x512xf32>
    %cst_3 = arith.constant dense<0.000000e+00> : vector<8xf32>
    %3 = vector.multi_reduction <add>, %2, %cst_3 [1] : vector<8x512xf32> to vector<8xf32>
    %4 = vector.shape_cast %3 : vector<8xf32> to vector<8x1xf32>
    %5 = arith.mulf %2, %2 : vector<8x512xf32>
    %cst_4 = arith.constant dense<0.000000e+00> : vector<8xf32>
    %6 = vector.multi_reduction <add>, %5, %cst_4 [1] : vector<8x512xf32> to vector<8xf32>
    %7 = vector.shape_cast %6 : vector<8xf32> to vector<8x1xf32>
    %cst_5 = arith.constant 5.120000e+02 : f32
    %8 = vector.broadcast %cst_5 : f32 to vector<8x1xf32>
    %9 = arith.divf %4, %8 : vector<8x1xf32>
    %cst_6 = arith.constant 5.120000e+02 : f32
    %10 = vector.broadcast %cst_6 : f32 to vector<8x1xf32>
    %11 = arith.divf %7, %10 : vector<8x1xf32>
    %12 = arith.mulf %9, %9 : vector<8x1xf32>
    %13 = arith.subf %11, %12 : vector<8x1xf32>
    %cst_7 = arith.constant 9.99999974E-6 : f32
    %14 = vector.broadcast %cst_7 : f32 to vector<8x1xf32>
    %15 = arith.addf %13, %14 : vector<8x1xf32>
    %16 = math.rsqrt %15 : vector<8x1xf32>
    %c0_8 = arith.constant 0 : index
    %c0_9 = arith.constant 0 : index
    %17 = vector.load %arg3[%c0_8, %c0_9] : memref<8x1xf32, #tpu.memory_space<vmem>>, vector<8x1xf32>
    %18 = arith.mulf %17, %16 : vector<8x1xf32>
    %c0_10 = arith.constant 0 : index
    %c0_11 = arith.constant 0 : index
    %19 = vector.load %arg4[%c0_10, %c0_11] : memref<8x1xf32, #tpu.memory_space<vmem>>, vector<8x1xf32>
    %20 = arith.mulf %9, %18 : vector<8x1xf32>
    %21 = arith.subf %19, %20 : vector<8x1xf32>
    %22 = vector.broadcast %18 : vector<8x1xf32> to vector<8x512xf32>
    %23 = arith.mulf %2, %22 : vector<8x512xf32>
    %24 = vector.broadcast %21 : vector<8x1xf32> to vector<8x512xf32>
    %25 = arith.addf %23, %24 : vector<8x512xf32>
    %cst_12 = arith.constant 0.000000e+00 : f32
    %26 = vector.broadcast %cst_12 : f32 to vector<8x512xf32>
    %27 = arith.maximumf %25, %26 : vector<8x512xf32>
    %c0_13 = arith.constant 0 : index
    %c0_14 = arith.constant 0 : index
    %28 = vector.load %arg5[%c0_13, %c0_14] : memref<8x512xf32, #tpu.memory_space<vmem>>, vector<8x512xf32>
    tpu.vector_store %arg5[%c0_13, %c0_14], %27 {strides = array<i32>} : memref<8x512xf32, #tpu.memory_space<vmem>>, vector<8x512xf32>,
    return
  }
  func.func @transform_0(%arg0: i32) -> (i32, i32) {
    %c0_i32 = arith.constant 0 : i32
    %c0_i32_0 = arith.constant 0 : i32
    %c0_i32_1 = arith.constant 0 : i32
    return %c0_i32, %c0_i32_0 : i32, i32
  }
  func.func @transform_1(%arg0: i32) -> (i32, i32) {
    %c0_i32 = arith.constant 0 : i32
    %c0_i32_0 = arith.constant 0 : i32
    %c0_i32_1 = arith.constant 0 : i32
    return %c0_i32, %c0_i32_0 : i32, i32
  }
  func.func @transform_2(%arg0: i32) -> (i32, i32) {
    %c0_i32 = arith.constant 0 : i32
    %c0_i32_0 = arith.constant 0 : i32
    %c0_i32_1 = arith.constant 0 : i32
    return %c0_i32, %c0_i32_0 : i32, i32
  }
  func.func @transform_3(%arg0: i32) -> (i32, i32) {
    %c0_i32 = arith.constant 0 : i32
    %c0_i32_0 = arith.constant 0 : i32
    %c0_i32_1 = arith.constant 0 : i32
    return %c0_i32, %c0_i32_0 : i32, i32
  }
  func.func @transform_4(%arg0: i32) -> (i32, i32) {
    %c0_i32 = arith.constant 0 : i32
    %c0_i32_0 = arith.constant 0 : i32
    %c0_i32_1 = arith.constant 0 : i32
    return %c0_i32, %c0_i32_0 : i32, i32
  }
}

</mosaic_0001>

<bundles_post_ra>
// kernel: tpu_custom_call.1
= control target key start
LH: loop header
LB: loop body
LE: loop exit
PB: predicated region body
PF: predicated region fallthrough
CT: control target
= control target key end

     0   :  { %9 = vsyncpa [#allocation3], 0  ;;  %s390_s0 = inlined_call_operand.hbm [shape: bf16[36,512], index: 0, kind: input, shape index: {}]   ;;  %s391_s1 = inlined_call_operand.vmem [shape: bf16[8,36], index: 1, kind: input, shape index: {}]   ;;  %s392_s2 = inlined_call_operand.vmem [shape: f32[8,1], index: 2, kind: input, shape index: {}]   ;;  %s393_s3 = inlined_call_operand.vmem [shape: f32[8,1], index: 3, kind: input, shape index: {}]   ;;  %s394_s4 = inlined_call_operand.hbm [shape: f32[8,512], index: 4, kind: output, shape index: {}]  }
   0x1   :  { %10 = vsyncpa [#allocation4], 0  ;;  %s345_s15 = smov [#allocation2]  }
   0x2   :  { %s16_s16 = sshll.u32 %s345_s15, 4  ;;  %s17_s16 = int_to_ptr.vmem [resolvable:$true] %s16_s16 }
   0x3   :  { %s309_s17 = scalar_lea.vmem %s17_s16, 1280  ;;  %p314_p1 = scmp.lt.s32.totalorder %s17_s16, %s17_s16 }
   0x4   :  { %p310_p0 = scmp.ne.s32.totalorder %s17_s16, %s309_s17  ;;  %p315_p2 = scmp.lt.s32.totalorder %s309_s17, %s309_s17 }
   0x6   :  { %p316_p3 = por %p315_p2, %p314_p1 }
   0x8   :  { %p317_p4 = pnand %p316_p3, %p310_p0 }
   0xa   :  { %320 = shalt.err (!%p317_p4)
}
   0xb   :  { %s346_s18 = smov 256   ;;  %s347_s19 = smov 16  }
   0xc   :  { %22 = dma.hbm_to_vmem [thread:$0]  %s390_s0, 1280, %s17_s16, [#allocation3], %s346_s18, %s346_s18, %s347_s19  }
   0xd   :  { %341 = dma.done.wait [#allocation3], 1280  }
   0xe   :  { %342 = vsyncadd [#allocation3], 4294966016  ;;  %v348_v0 = vmov 0   ;;  %v42_v1 = vld [vmem:[#allocation2 + $0x40] sm:$0x33]  ;;  %vm98_vm0 = vcmask 1041408  }
   0xf   :  { %143 = vmatprep.mubr.bf16.mxu0 %v348_v0  ;;  %184 = vmatprep.mubr.bf16.mxu1 %v348_v0  ;;  %v43_v2 = vld [vmem:[#allocation2 + $0x48] sm:$0x33]  ;;  %v269_v3 = vcombine.high %v42_v1, %v42_v1  ;;  %v268_v5 = vcombine.low %v42_v1, %v42_v1  ;;  %v287_v7 = vld [vmem:[#allocation2 + $0x24] ss:$16 sps:$4 sm:$0xff]   ;;  %v291_v11 = vld [vmem:[#allocation2 + $0x20] ss:$16 sps:$4 sm:$0xff]  }
  0x10   :  { %281 = vset.pattern.permute.xlu1 %v348_v0  ;;  %282 = vset.pattern.permute.xlu0 %v348_v0  ;;  %v271_v4 = vcombine.high %v43_v2, %v43_v2  ;;  %v270_v6 = vcombine.low %v43_v2, %v43_v2  ;;  %v289_v8 = vld [vmem:[#allocation2 + $0x2c] ss:$16 sps:$4 sm:$0xff]   ;;  %v292_v12 = vld [vmem:[#allocation2 + $0x28] ss:$16 sps:$4 sm:$0xff]   ;;  %v293_v13 = vld [vmem:[#allocation2 + $0x4] ss:$16 sps:$4 sm:$0xff]  }
  0x11   :  { %272 = vmatprep.subr.msk.bf16.mxu0 %vm98_vm0, %v269_v3  ;;  %v100_v9 = vsel %vm98_vm0, %v268_v5, 0  ;;  %v295_v14 = vld [vmem:[#allocation2 + $0xc] ss:$16 sps:$4 sm:$0xff]   ;;  %v297_v15 = vld [vmem:[#allocation2] ss:$16 sps:$4 sm:$0xff]   ;;  %vm94_vm1 = vcmask 293888  }
  0x12   :  { %274 = vmatprep.subr.msk.bf16.mxu1 %vm98_vm0, %v271_v4  ;;  %v106_v10 = vsel %vm98_vm0, %v270_v6, 0  ;;  %122 = vmatpush1.bf16.msra.mxu0 %v100_v9  ;;  %v298_v16 = vld [vmem:[#allocation2 + $0x8] ss:$16 sps:$4 sm:$0xff]   ;;  %v33_v17 = vld [vmem:[%s391_s1] sm:$0xf]  ;;  %s349_s26 = smov [#allocation5]  }
  0x13   :  { %163 = vmatpush1.bf16.msra.mxu1 %v106_v10  ;;  %123 = vmatprep.subr.bf16.mxu0 %v287_v7  ;;  %v214_v43 = vld [vmem:[%s392_s2] sm:$0xff]  ;;  %s251_s27 = sshll.u32 %s349_s26, 4  ;;  %s252_s27 = int_to_ptr.vmem [resolvable:$true] %s251_s27 }
  0x14   :  { %164 = vmatprep.subr.bf16.mxu1 %v289_v8  ;;  %v216_v46 = vld [vmem:[%s393_s3] sm:$0xff]  ;;  %s321_s2 = scalar_lea.vmem %s252_s27, 512  ;;  %p326_p6 = scmp.lt.s32.totalorder %s252_s27, %s252_s27 }
  0x15   :  { %p322_p5 = scmp.ne.s32.totalorder %s252_s27, %s321_s2  ;;  %p327_p7 = scmp.lt.s32.totalorder %s321_s2, %s321_s2 }
  0x16   :  { %124 = vmatpush1.bf16.msra.mxu0 %v291_v11 }
  0x17   :  { %165 = vmatpush1.bf16.msra.mxu1 %v292_v12  ;;  %125 = vmatprep.subr.bf16.mxu0 %v293_v13  ;;  %p328_p8 = por %p327_p7, %p326_p6 }
  0x18   :  { %166 = vmatprep.subr.bf16.mxu1 %v295_v14 }
  0x19   :  { %p329_p9 = pnand %p328_p8, %p322_p5 }
  0x1a   :  { %126 = vmatpush1.bf16.msra.mxu0 %v297_v15 }
  0x1b   :  { %167 = vmatpush1.bf16.msra.mxu1 %v298_v16 }
  0x1d   :  { %273 = vmatmul.mubr.msk.bf16.vlgmr.msra.gmra.mxu0 %vm94_vm1, %v33_v17 }
  0x1e   :  { %275 = vmatmul.mubr.msk.bf16.vlgmr.msra.gmra.mxu1 %vm94_vm1, %v33_v17 }
  0xdd   :  { %v145_v18 = vpop.f32.mrf.mxu0 }
  0xde   :  { %v186_v19 = vpop.f32.mrf.mxu1  ;;  %v198_v22 = vmul.f32 %v145_v18, %v145_v18 }
  0xdf   :  { %v147_v20 = vpop.f32.mrf.mxu0  ;;  %v200_v23 = vmul.f32 %v186_v19, %v186_v19 }
  0xe0   :  { %v188_v21 = vpop.f32.mrf.mxu1  ;;  %v193_v24 = vadd.f32 %v147_v20, %v145_v18  ;;  %v199_v25 = vmul.f32 %v147_v20, %v147_v20 }
  0xe1   :  { %v149_v26 = vpop.f32.mrf.mxu0  ;;  %v201_v34 = vmul.f32 %v188_v21, %v188_v21 }
  0xe2   :  { %v190_v27 = vpop.f32.mrf.mxu1  ;;  %v194_v28 = vadd.f32 %v193_v24, %v186_v19  ;;  %v202_v29 = vadd.f32 %v199_v25, %v198_v22 }
  0xe3   :  { %v150_v30 = vpop.f32.mrf.mxu0 }
  0xe4   :  { %v191_v31 = vpop.f32.mrf.mxu1  ;;  %v195_v32 = vadd.f32 %v194_v28, %v188_v21  ;;  %v203_v33 = vadd.f32 %v202_v29, %v200_v23 }
  0xe6   :  { %196 = vadd.xlane.f32.xlu0 %v195_v32  ;;  %v204_v35 = vadd.f32 %v203_v33, %v201_v34 }
  0xea   :  { %205 = vadd.xlane.f32.xlu0 %v204_v35 }
 0x16f   :  { %v197_v36 = vpop.xlane.xlu0 %196 }
 0x170   :  { %v208_v37 = vmul.f32 0.001953125, %v197_v36 }
 0x172   :  { %v210_v39 = vmul.f32 %v208_v37, %v208_v37 }
 0x173   :  { %v206_v38 = vpop.xlane.xlu0 %205 }
 0x174   :  { %v209_v40 = vmul.f32 0.001953125, %v206_v38 }
 0x176   :  { %v211_v41 = vsub.f32 %v209_v40, %v210_v39 }
 0x178   :  { %v212_v42 = vadd.f32 1e-05, %v211_v41 }
 0x17a   :  { %299 = vrsqrt.f32 %v212_v42 }
 0x187   :  { %v300_v44 = vpop.eup %299 }
 0x188   :  { %v215_v45 = vmul.f32 %v300_v44, %v214_v43 }
 0x18a   :  { %221 = vperm.xlu1 %281, %v215_v45   ;;  %v217_v47 = vmul.f32 %v215_v45, %v208_v37 }
 0x18c   :  { %v218_v48 = vsub.f32 %v216_v46, %v217_v47 }
 0x18e   :  { %230 = vperm.xlu1 %281, %v218_v48  }
 0x205   :  { %v222_v49 = vpop.permute.xlu1 %221 }
 0x206   :  { %v224_v50 = vmul.f32 %v222_v49, %v145_v18  ;;  %v225_v51 = vmul.f32 %v222_v49, %v147_v20  ;;  %v226_v52 = vmul.f32 %v222_v49, %v186_v19  ;;  %v227_v53 = vmul.f32 %v222_v49, %v188_v21 }
 0x209   :  { %v231_v54 = vpop.permute.xlu1 %230 }
 0x20a   :  { %v233_v55 = vadd.f32 %v231_v54, %v224_v50  ;;  %v234_v56 = vadd.f32 %v231_v54, %v225_v51  ;;  %v235_v57 = vadd.f32 %v231_v54, %v226_v52  ;;  %v236_v58 = vadd.f32 %v231_v54, %v227_v53 }
 0x20c   :  { %v237_v59 = vmax.f32 %v233_v55, 0.0  ;;  %v238_v60 = vmax.f32 %v234_v56, 0.0  ;;  %v239_v61 = vmax.f32 %v235_v57, 0.0  ;;  %v240_v62 = vmax.f32 %v236_v58, 0.0 }
 0x20e   :  { %241 = vst [vmem:[#allocation5] sm:$0xff] %v237_v59  ;;  %242 = vst [vmem:[#allocation5 + $0x8] sm:$0xff] %v238_v60 }
 0x20f   :  { %243 = vst [vmem:[#allocation5 + $0x10] sm:$0xff] %v239_v61  ;;  %244 = vst [vmem:[#allocation5 + $0x18] sm:$0xff] %v240_v62 }
 0x210   :  { %332 = shalt.err (!%p329_p9)
}
 0x211   :  { %254 = dma.vmem_to_hbm [thread:$0]  %s252_s27, 512, %s394_s4, [#allocation4]  }
 0x212   :  { %343 = dma.done.wait [#allocation4], 512  }
 0x213   :  { %344 = vsyncadd [#allocation4], 4294966784 }
 0x214   :  { %258 = vsyncpa [#allocation3], 1 }
 0x215   :  { %259 = vsyncpa [#allocation4], 1 }

</bundles_post_ra>
